<compile_context>
chip_gen: v5e
topology: v5e:2x2
jax: 0.10.0
libtpu: 0.0.40
codegen_flags: <defaults>
</compile_context>

<pallas_src>
import functools

import jax
import jax.numpy as jnp
from jax import lax
from jax.experimental import pallas as pl
from jax.experimental.pallas import tpu as pltpu
import numpy as np

_NEG_BIG = -1e30


# --------------------------- fused single-pass kernel ------------------------
def _fused_kernel(x_ref, wkT_ref, bk_ref, waT_ref, ba_ref, wvmT_ref, bvm_ref,
                  o_ref):
    """Whole image resident: out = x + (wvm^T pooled + bvm) * sigmoid(wa^T x + ba)."""
    f32 = jnp.float32
    x = x_ref[0]                                                      # (C, S)

    # Spatial softmax weights (lane-dense row).
    k_log = jnp.dot(wkT_ref[...], x, preferred_element_type=f32) + bk_ref[...]
    m = jnp.max(k_log, axis=-1, keepdims=True)                        # (1, 1)
    p = jnp.exp(k_log - m)                                            # (1, S)
    l = jnp.sum(p, axis=-1, keepdims=True)                            # (1, 1)

    # pooled = x @ softmax^T -> (C, 1); contract the lane dim of both operands.
    pooled = lax.dot_general(x, p.astype(x.dtype),
                             (((1,), (1,)), ((), ())),
                             preferred_element_type=f32)
    pooled = pooled * pl.reciprocal(l, approx=True)

    # Folded v/m projection: y2 = (wv@wm)^T pooled + (bv@wm + bm)^T -> (C, 1).
    y2 = jnp.dot(wvmT_ref[...], pooled, preferred_element_type=f32) + bvm_ref[...]

    # Per-pixel gate (lane-dense row) and residual add (lane-dense store).
    a = jax.nn.sigmoid(
        jnp.dot(waT_ref[...], x, preferred_element_type=f32) + ba_ref[...])
    o_ref[0] = (x.astype(f32) + y2 * a).astype(o_ref.dtype)


# ------------------- tiled fallback, pass 1: online pooling ------------------
def _pool_kernel(x_ref, wkT_ref, bk_ref, pooled_ref, m_sc, l_sc, acc_sc,
                 *, tile_s, true_s, needs_mask):
    """Online-softmax spatial pooling over lane-dense (C, tS) tiles.

    Accumulates across the innermost grid axis ('arbitrary'; scratch re-init
    at t==0 relies on that axis ordering) and emits the softmax-pooled
    channel vector (C, 1) on the last tile.
    """
    f32 = jnp.float32
    t = pl.program_id(1)

    @pl.when(t == 0)
    def _():
        m_sc[...] = jnp.full_like(m_sc, _NEG_BIG)
        l_sc[...] = jnp.zeros_like(l_sc)
        acc_sc[...] = jnp.zeros_like(acc_sc)

    x = x_ref[0]                                                      # (C, tS)
    k_log = jnp.dot(wkT_ref[...], x, preferred_element_type=f32) + bk_ref[...]
    if needs_mask:  # only the ragged last tile has padded lanes
        lane = lax.broadcasted_iota(jnp.int32, k_log.shape, 1) + t * tile_s
        k_log = jnp.where(lane < true_s, k_log, _NEG_BIG)

    m_prev = m_sc[...]
    m_new = jnp.maximum(m_prev, jnp.max(k_log, axis=-1, keepdims=True))
    alpha = jnp.exp(m_prev - m_new)
    p = jnp.exp(k_log - m_new)                                        # (1, tS)
    l_sc[...] = alpha * l_sc[...] + jnp.sum(p, axis=-1, keepdims=True)
    acc_sc[...] = alpha * acc_sc[...] + lax.dot_general(
        x, p.astype(x.dtype), (((1,), (1,)), ((), ())),
        preferred_element_type=f32)                                   # (C, 1)
    m_sc[...] = m_new

    @pl.when(t == pl.num_programs(1) - 1)
    def _():
        pooled_ref[0] = (acc_sc[...] *
                         pl.reciprocal(l_sc[...], approx=True)
                         ).astype(pooled_ref.dtype)


# ---------------------- tiled fallback, pass 2: apply ------------------------
def _apply_kernel(x_ref, y2_ref, waT_ref, ba_ref, o_ref):
    """out = x + y2 * sigmoid(wa^T x + ba) on lane-dense (C, tS) tiles."""
    f32 = jnp.float32
    x = x_ref[0]                                                      # (C, tS)
    a = jax.nn.sigmoid(
        jnp.dot(waT_ref[...], x, preferred_element_type=f32) + ba_ref[...])
    y2 = y2_ref[0].astype(f32)                                        # (C, 1)
    o_ref[0] = (x.astype(f32) + y2 * a).astype(o_ref.dtype)


# ------------------------------- VMEM budgeting ------------------------------
def _vmem_capacity_bytes():
    try:
        cap = getattr(pltpu.get_tpu_info(), "vmem_capacity_bytes", None)
        if cap:
            return max(16 << 20, min(int(cap), 128 << 20))
    except Exception:
        pass
    return 64 << 20   # conservative fallback (v7x per-core VMEM)


# ---------------------------------- wrapper ----------------------------------
def context_aggregation(x_nchw, params, *, block_budget_bytes=None):
    """ContextAggregation forward. x_nchw: (N, C, H, W); params: 1x1-conv weights."""
    N, C, H, W = x_nchw.shape
    S = H * W
    f32 = jnp.float32
    itemsize = jnp.dtype(x_nchw.dtype).itemsize

    # Free reshape (merges trailing dims) -- no HBM transpose around kernels.
    x = x_nchw.reshape(N, C, S)

    # Weights oriented for channels-on-sublanes / spatial-on-lanes layout.
    wkT = params["wk"].astype(f32).T                                  # (1, C)
    bk = params["bk"].astype(f32).reshape(1, 1)
    waT = params["wa"].astype(f32).T                                  # (1, C)
    ba = params["ba"].astype(f32).reshape(1, 1)
    # Fold conv_v and conv_m (exact at the module's zero-init of conv_m).
    wvm = params["wv"].astype(f32) @ params["wm"].astype(f32)         # (C, C)
    bvm = (params["bv"].astype(f32) @ params["wm"].astype(f32)
           + params["bm"].astype(f32))                                # (1, C)

    vmem_cap = _vmem_capacity_bytes()
    vmem_limit = int(vmem_cap * 3 // 4)        # ~48 MiB v7x, ~96 MiB v5e/v6e
    if block_budget_bytes is None:
        block_budget_bytes = max(2 << 20, vmem_cap // 16)   # ~4 MiB v7x, ~8 MiB v5e/v6e
    image_bytes = C * S * itemsize

    if image_bytes <= block_budget_bytes:
        # ---------------- fused single pass: one read + one write of x -------
        cost = pl.CostEstimate(
            flops=int(N * (6 * C * S + 2 * C * C)),
            transcendentals=int(2 * N * S),
            bytes_accessed=int(2 * N * image_bytes + (C * C + 3 * C + 2) * 4))
        full = lambda shape: pl.BlockSpec(shape, lambda n, _s=shape: (0,) * len(_s))
        out = pl.pallas_call(
            _fused_kernel,
            out_shape=jax.ShapeDtypeStruct((N, C, S), x.dtype),
            grid_spec=pltpu.PrefetchScalarGridSpec(
                num_scalar_prefetch=0,
                grid=(N,),
                in_specs=[
                    pl.BlockSpec((1, C, S), lambda n: (n, 0, 0)),     # x
                    full((1, C)), full((1, 1)),                       # wk^T, bk
                    full((1, C)), full((1, 1)),                       # wa^T, ba
                    full((C, C)), full((C, 1)),                       # (wv@wm)^T, bvm^T
                ],
                out_specs=pl.BlockSpec((1, C, S), lambda n: (n, 0, 0)),
            ),
            compiler_params=pltpu.CompilerParams(
                dimension_semantics=("parallel",),
                vmem_limit_bytes=vmem_limit),
            cost_estimate=cost,
        )(x, wkT, bk, waT, ba, wvm.T, bvm.T)
        return out.reshape(N, C, H, W)

    # -------------------- tiled two-pass fallback (large S) ------------------
    # TODO(synk): on v7x with N < num_cores, additionally split S across the
    # two TensorCores (leading parallel axis with per-core partial (m, l, acc))
    # so pass 1 does not leave a core idle.
    lanes = 128
    tS = max(lanes, (block_budget_bytes // max(1, C * itemsize)) // lanes * lanes)
    nT = -(-S // tS)
    Spad = nT * tS
    needs_mask = Spad != S
    x_p = jnp.pad(x, ((0, 0), (0, 0), (0, Spad - S))) if needs_mask else x

    full2 = lambda shape: pl.BlockSpec(shape, lambda n, t, _s=shape: (0,) * len(_s))

    pool = functools.partial(_pool_kernel, tile_s=tS, true_s=S,
                             needs_mask=needs_mask)
    cost1 = pl.CostEstimate(
        flops=int(4 * N * C * S), transcendentals=int(N * S),
        bytes_accessed=int(N * C * Spad * itemsize + N * C * 4))
    pooled = pl.pallas_call(
        pool,
        out_shape=jax.ShapeDtypeStruct((N, C, 1), jnp.float32),
        grid_spec=pltpu.PrefetchScalarGridSpec(
            num_scalar_prefetch=0,
            grid=(N, nT),
            in_specs=[
                pl.BlockSpec((1, C, tS), lambda n, t: (n, 0, t)),     # x
                full2((1, C)), full2((1, 1)),                         # wk^T, bk
            ],
            out_specs=pl.BlockSpec((1, C, 1), lambda n, t: (n, 0, 0)),
            scratch_shapes=[pltpu.VMEM((1, 1), jnp.float32),          # running max
                            pltpu.VMEM((1, 1), jnp.float32),          # running denom
                            pltpu.VMEM((C, 1), jnp.float32)],         # weighted x-sum
        ),
        compiler_params=pltpu.CompilerParams(
            dimension_semantics=("parallel", "arbitrary"),
            vmem_limit_bytes=vmem_limit),
        cost_estimate=cost1,
    )(x_p, wkT, bk)

    # Tiny (N, C) @ (C, C) projection hoisted out of the kernel (plain XLA).
    y2 = (pooled[:, :, 0] @ wvm + bvm)[:, :, None]                    # (N, C, 1) f32

    cost2 = pl.CostEstimate(
        flops=int(5 * N * C * S), transcendentals=int(N * S),
        bytes_accessed=int(2 * N * C * Spad * itemsize + N * C * 4))
    out = pl.pallas_call(
        _apply_kernel,
        out_shape=jax.ShapeDtypeStruct((N, C, Spad), x.dtype),
        grid_spec=pltpu.PrefetchScalarGridSpec(
            num_scalar_prefetch=0,
            grid=(N, nT),
            in_specs=[
                pl.BlockSpec((1, C, tS), lambda n, t: (n, 0, t)),     # x
                pl.BlockSpec((1, C, 1), lambda n, t: (n, 0, 0)),      # y2
                full2((1, C)), full2((1, 1)),                         # wa^T, ba
            ],
            out_specs=pl.BlockSpec((1, C, tS), lambda n, t: (n, 0, t)),
        ),
        compiler_params=pltpu.CompilerParams(
            dimension_semantics=("parallel", "parallel"),
            vmem_limit_bytes=vmem_limit),
        cost_estimate=cost2,
    )(x_p, y2, waT, ba)

    if needs_mask:
        out = out[:, :, :S]   # drop padded lanes (rare, ragged-S path only)
    return out.reshape(N, C, H, W)


# --------------------------------- reference ---------------------------------
def _reference(x_nchw, params):
    """Plain-JAX f32 reference mirroring the PyTorch forward."""
    N, C, H, W = x_nchw.shape
    S = H * W
    x = jnp.transpose(x_nchw, (0, 2, 3, 1)).reshape(N, S, C).astype(jnp.float32)
    a = jax.nn.sigmoid(x @ params["wa"] + params["ba"])               # (N,S,1)
    k = jax.nn.softmax(x @ params["wk"] + params["bk"], axis=1)       # (N,S,1)
    v = x @ params["wv"] + params["bv"]                               # (N,S,Ci)
    y = jnp.sum(v * k, axis=1, keepdims=True)                         # (N,1,Ci)
    y2 = y @ params["wm"] + params["bm"]                              # (N,1,C)
    out = x + y2 * a
    return jnp.transpose(out.reshape(N, H, W, C), (0, 3, 1, 2))


def make_params(key, C, reduction=1):
    Ci = max(C // reduction, 1)
    ks = jax.random.split(key, 8)
    # The PyTorch module zero-inits conv_m (forward == identity at init);
    # small random weights are used so the kernel path is exercised.
    s = 0.1
    return {
        "wa": s * jax.random.normal(ks[0], (C, 1), jnp.float32),
        "ba": s * jax.random.normal(ks[1], (1, 1), jnp.float32),
        "wk": s * jax.random.normal(ks[2], (C, 1), jnp.float32),
        "bk": s * jax.random.normal(ks[3], (1, 1), jnp.float32),
        "wv": s * jax.random.normal(ks[4], (C, Ci), jnp.float32),
        "bv": s * jax.random.normal(ks[5], (1, Ci), jnp.float32),
        "wm": s * jax.random.normal(ks[6], (Ci, C), jnp.float32),
        "bm": s * jax.random.normal(ks[7], (1, C), jnp.float32),
    }


if __name__ == "__main__":
    key = jax.random.PRNGKey(0)

    cases = [
        # (N, C, H, W, reduction, dtype, forced block budget)
        (2, 4, 16, 16, 1, jnp.float32, None),   # fused single-pass path
        (1, 8, 8, 8, 2, jnp.float32, None),     # fused path, S < 128
        (2, 8, 16, 16, 2, jnp.float32, 4096),   # tiled two-pass, S % tS == 0
        (2, 4, 20, 20, 1, jnp.float32, 2048),   # tiled two-pass, ragged last tile
        (2, 4, 16, 16, 1, jnp.bfloat16, None),  # fused path, bf16 activations
    ]
    for (N, C, H, W, red, dtype, budget) in cases:
        kx, kp = jax.random.split(jax.random.fold_in(key, N * 1000 + C * 100 + H))
        x = jax.random.normal(kx, (N, C, H, W), jnp.float32).astype(dtype)
        params = make_params(kp, C, reduction=red)

        out = jax.block_until_ready(
            context_aggregation(x, params, block_budget_bytes=budget))
        ref = _reference(x, params)
        tol = 3e-2 if dtype == jnp.bfloat16 else 2e-3
        np.testing.assert_allclose(np.asarray(out, dtype=np.float32),
                                   np.asarray(ref, dtype=np.float32),
                                   rtol=tol, atol=tol)

    print("KERNEL_OK")
</pallas_src>

<mosaic_0001>
module attributes {stable_mosaic.version = 11 : i64} {
  func.func @_fused_kernel(%arg0: i32, %arg1: memref<1x4x256xf32, #tpu.memory_space<vmem>>, %arg2: memref<1x4xf32, #tpu.memory_space<vmem>>, %arg3: memref<1x1xf32, #tpu.memory_space<vmem>>, %arg4: memref<1x4xf32, #tpu.memory_space<vmem>>, %arg5: memref<1x1xf32, #tpu.memory_space<vmem>>, %arg6: memref<4x4xf32, #tpu.memory_space<vmem>>, %arg7: memref<4x1xf32, #tpu.memory_space<vmem>>, %arg8: memref<1x4x256xf32, #tpu.memory_space<vmem>>) attributes {dimension_semantics = [#tpu.dimension_semantics<parallel>], iteration_bounds = array<i64: 2>, scalar_prefetch = 0 : i64, scratch_operands = 0 : i64, tpu.core_type = #tpu.core_type<tc>, window_params = [{transform_indices = @transform_0, window_bounds = array<i64: 1, 4, 256>}, {pipeline_mode = #tpu.pipeline_mode<synchronous>, transform_indices = @transform_1, window_bounds = array<i64: 1, 4>}, {pipeline_mode = #tpu.pipeline_mode<synchronous>, transform_indices = @transform_2, window_bounds = array<i64: 1, 1>}, {pipeline_mode = #tpu.pipeline_mode<synchronous>, transform_indices = @transform_3, window_bounds = array<i64: 1, 4>}, {pipeline_mode = #tpu.pipeline_mode<synchronous>, transform_indices = @transform_4, window_bounds = array<i64: 1, 1>}, {pipeline_mode = #tpu.pipeline_mode<synchronous>, transform_indices = @transform_5, window_bounds = array<i64: 4, 4>}, {pipeline_mode = #tpu.pipeline_mode<synchronous>, transform_indices = @transform_6, window_bounds = array<i64: 4, 1>}, {transform_indices = @transform_7, window_bounds = array<i64: 1, 4, 256>}]} {
    %c0 = arith.constant 0 : index
    %c0_0 = arith.constant 0 : index
    %c0_1 = arith.constant 0 : index
    %0 = vector.load %arg1[%c0, %c0_0, %c0_1] : memref<1x4x256xf32, #tpu.memory_space<vmem>>, vector<1x4x256xf32>
    %1 = vector.shape_cast %0 : vector<1x4x256xf32> to vector<4x256xf32>
    %c0_2 = arith.constant 0 : index
    %c0_3 = arith.constant 0 : index
    %2 = vector.load %arg2[%c0_2, %c0_3] : memref<1x4xf32, #tpu.memory_space<vmem>>, vector<1x4xf32>
    %cst = arith.constant dense<0.000000e+00> : vector<1x256xf32>
    %3 = tpu.matmul %2, %1, %cst {dimension_numbers = #tpu.dot_dimension_numbers<[1], [0], [0], [1], [0, 0, 1, 1], [], []>} : vector<1x4xf32>, vector<4x256xf32>, vector<1x256xf32> -> vector<1x256xf32>
    %c0_4 = arith.constant 0 : index
    %c0_5 = arith.constant 0 : index
    %4 = vector.load %arg3[%c0_4, %c0_5] : memref<1x1xf32, #tpu.memory_space<vmem>>, vector<1x1xf32>
    %5 = vector.broadcast %4 : vector<1x1xf32> to vector<1x256xf32>
    %6 = arith.addf %3, %5 : vector<1x256xf32>
    %cst_6 = arith.constant dense<0xFF800000> : vector<1xf32>
    %7 = vector.multi_reduction <maximumf>, %6, %cst_6 [1] : vector<1x256xf32> to vector<1xf32>
    %8 = vector.shape_cast %7 : vector<1xf32> to vector<1x1xf32>
    %9 = vector.broadcast %8 : vector<1x1xf32> to vector<1x256xf32>
    %10 = arith.subf %6, %9 : vector<1x256xf32>
    %11 = math.exp %10 : vector<1x256xf32>
    %cst_7 = arith.constant dense<0.000000e+00> : vector<1xf32>
    %12 = vector.multi_reduction <add>, %11, %cst_7 [1] : vector<1x256xf32> to vector<1xf32>
    %13 = vector.shape_cast %12 : vector<1xf32> to vector<1x1xf32>
    %cst_8 = arith.constant dense<0.000000e+00> : vector<4x1xf32>
    %14 = tpu.matmul %1, %11, %cst_8 {dimension_numbers = #tpu.dot_dimension_numbers<[1], [1], [0], [0], [0, 0, 1, 0], [], []>} : vector<4x256xf32>, vector<1x256xf32>, vector<4x1xf32> -> vector<4x1xf32>
    %15 = tpu.reciprocal %13 {approx = true} : vector<1x1xf32> -> vector<1x1xf32>
    %16 = vector.broadcast %15 : vector<1x1xf32> to vector<4x1xf32>
    %17 = arith.mulf %14, %16 : vector<4x1xf32>
    %c0_9 = arith.constant 0 : index
    %c0_10 = arith.constant 0 : index
    %18 = vector.load %arg6[%c0_9, %c0_10] : memref<4x4xf32, #tpu.memory_space<vmem>>, vector<4x4xf32>
    %cst_11 = arith.constant dense<0.000000e+00> : vector<4x1xf32>
    %19 = tpu.matmul %18, %17, %cst_11 {dimension_numbers = #tpu.dot_dimension_numbers<[1], [0], [0], [1], [0, 0, 1, 1], [], []>} : vector<4x4xf32>, vector<4x1xf32>, vector<4x1xf32> -> vector<4x1xf32>
    %c0_12 = arith.constant 0 : index
    %c0_13 = arith.constant 0 : index
    %20 = vector.load %arg7[%c0_12, %c0_13] : memref<4x1xf32, #tpu.memory_space<vmem>>, vector<4x1xf32>
    %21 = arith.addf %19, %20 : vector<4x1xf32>
    %c0_14 = arith.constant 0 : index
    %c0_15 = arith.constant 0 : index
    %22 = vector.load %arg4[%c0_14, %c0_15] : memref<1x4xf32, #tpu.memory_space<vmem>>, vector<1x4xf32>
    %cst_16 = arith.constant dense<0.000000e+00> : vector<1x256xf32>
    %23 = tpu.matmul %22, %1, %cst_16 {dimension_numbers = #tpu.dot_dimension_numbers<[1], [0], [0], [1], [0, 0, 1, 1], [], []>} : vector<1x4xf32>, vector<4x256xf32>, vector<1x256xf32> -> vector<1x256xf32>
    %c0_17 = arith.constant 0 : index
    %c0_18 = arith.constant 0 : index
    %24 = vector.load %arg5[%c0_17, %c0_18] : memref<1x1xf32, #tpu.memory_space<vmem>>, vector<1x1xf32>
    %25 = vector.broadcast %24 : vector<1x1xf32> to vector<1x256xf32>
    %26 = arith.addf %23, %25 : vector<1x256xf32>
    %27 = arith.negf %26 : vector<1x256xf32>
    %28 = math.exp %27 : vector<1x256xf32>
    %cst_19 = arith.constant 1.000000e+00 : f32
    %29 = vector.broadcast %cst_19 : f32 to vector<1x256xf32>
    %30 = arith.addf %29, %28 : vector<1x256xf32>
    %31 = arith.divf %29, %30 : vector<1x256xf32>
    %32 = vector.broadcast %21 : vector<4x1xf32> to vector<4x256xf32>
    %33 = vector.broadcast %31 : vector<1x256xf32> to vector<4x256xf32>
    %34 = arith.mulf %32, %33 : vector<4x256xf32>
    %35 = arith.addf %1, %34 : vector<4x256xf32>
    %c0_20 = arith.constant 0 : index
    %c0_21 = arith.constant 0 : index
    %c0_22 = arith.constant 0 : index
    %36 = vector.load %arg8[%c0_20, %c0_21, %c0_22] : memref<1x4x256xf32, #tpu.memory_space<vmem>>, vector<1x4x256xf32>
    %37 = vector.shape_cast %36 : vector<1x4x256xf32> to vector<4x256xf32>
    %38 = vector.shape_cast %35 : vector<4x256xf32> to vector<1x4x256xf32>
    tpu.vector_store %arg8[%c0_20, %c0_21, %c0_22], %38 {strides = array<i32>} : memref<1x4x256xf32, #tpu.memory_space<vmem>>, vector<1x4x256xf32>,
    return
  }
  func.func @transform_0(%arg0: i32) -> (i32, i32, i32) {
    %c0_i32 = arith.constant 0 : i32
    %c0_i32_0 = arith.constant 0 : i32
    %c0_i32_1 = arith.constant 0 : i32
    return %arg0, %c0_i32, %c0_i32_0 : i32, i32, i32
  }
  func.func @transform_1(%arg0: i32) -> (i32, i32) {
    %c0_i32 = arith.constant 0 : i32
    %c0_i32_0 = arith.constant 0 : i32
    %c0_i32_1 = arith.constant 0 : i32
    return %c0_i32, %c0_i32_0 : i32, i32
  }
  func.func @transform_2(%arg0: i32) -> (i32, i32) {
    %c0_i32 = arith.constant 0 : i32
    %c0_i32_0 = arith.constant 0 : i32
    %c0_i32_1 = arith.constant 0 : i32
    return %c0_i32, %c0_i32_0 : i32, i32
  }
  func.func @transform_3(%arg0: i32) -> (i32, i32) {
    %c0_i32 = arith.constant 0 : i32
    %c0_i32_0 = arith.constant 0 : i32
    %c0_i32_1 = arith.constant 0 : i32
    return %c0_i32, %c0_i32_0 : i32, i32
  }
  func.func @transform_4(%arg0: i32) -> (i32, i32) {
    %c0_i32 = arith.constant 0 : i32
    %c0_i32_0 = arith.constant 0 : i32
    %c0_i32_1 = arith.constant 0 : i32
    return %c0_i32, %c0_i32_0 : i32, i32
  }
  func.func @transform_5(%arg0: i32) -> (i32, i32) {
    %c0_i32 = arith.constant 0 : i32
    %c0_i32_0 = arith.constant 0 : i32
    %c0_i32_1 = arith.constant 0 : i32
    return %c0_i32, %c0_i32_0 : i32, i32
  }
  func.func @transform_6(%arg0: i32) -> (i32, i32) {
    %c0_i32 = arith.constant 0 : i32
    %c0_i32_0 = arith.constant 0 : i32
    %c0_i32_1 = arith.constant 0 : i32
    return %c0_i32, %c0_i32_0 : i32, i32
  }
  func.func @transform_7(%arg0: i32) -> (i32, i32, i32) {
    %c0_i32 = arith.constant 0 : i32
    %c0_i32_0 = arith.constant 0 : i32
    %c0_i32_1 = arith.constant 0 : i32
    return %arg0, %c0_i32, %c0_i32_0 : i32, i32, i32
  }
}

</mosaic_0001>

<bundles_post_ra>
// kernel: tpu_custom_call.1
= control target key start
LH: loop header
LB: loop body
LE: loop exit
PB: predicated region body
PF: predicated region fallthrough
CT: control target
= control target key end

     0   :  { %s1032_s0 = inlined_call_operand.hbm [shape: f32[2,4,256], index: 0, kind: input, shape index: {}]   ;;  %s1033_s1 = inlined_call_operand.vmem [shape: f32[1,4], index: 1, kind: input, shape index: {}]   ;;  %s1034_s2 = inlined_call_operand.<no memory space> [shape: f32[1,1], index: 2, kind: input, shape index: {}]   ;;  %s1035_s3 = inlined_call_operand.vmem [shape: f32[1,4], index: 3, kind: input, shape index: {}]   ;;  %s1036_s5 = inlined_call_operand.vmem [shape: f32[4,4], index: 5, kind: input, shape index: {}]   ;;  %s1037_s6 = inlined_call_operand.vmem [shape: f32[4,1], index: 6, kind: input, shape index: {}]   ;;  %s1038_s7 = inlined_call_operand.hbm [shape: f32[2,4,256], index: 7, kind: output, shape index: {}]   ;;  %s1039_s4 = inlined_call_operand.<no memory space> [shape: f32[1,1], index: 4, kind: input, shape index: {}]  }
   0x1   :  { %v12_v0 = vstv %s1034_s2  ;;  %v14_v1 = vstv %s1039_s4 }
   0x2   :  { %13 = vst [vmem:[#allocation2] sm:$0x1] %v12_v0 }
   0x3   :  { %15 = vst [vmem:[#allocation3] sm:$0x1] %v14_v1 }
   0x4   :  { %16 = vsyncpa [#allocation5], 0 }
   0x5   :  { %18 = vsyncpa [#allocation5 + $0x1], 0 }
   0x6   :  { %19 = vsyncpa [#allocation6], 0 }
   0x7   :  { %21 = vsyncpa [#allocation6 + $0x1], 0  ;;  %s865_s28 = smov 0   ;;  %s867_s29 = smov 0  }
   0x8   :  { %s869_s30 = smov 0   ;;  %s871_s8 = smov 0  }
   0x9 LB: > { %s886_s2 = sadd.s32 4294967295, %s816_s8   ;;  %s629_s4 = sadd.s32 4294967294, %s816_s8   ;;  %s816_s8 = sphi %s871_s8, %s1049_s8   ;;  %s812_s30 = sphi %s869_s30, %s1048_s30   ;;  %s808_s29 = sphi %s867_s29, %s1047_s29   ;;  %s804_s28 = sphi %s865_s28, %s1046_s28  }
   0xa   : > { %s890_s9 = sadd.s32 1, %s816_s8   ;;  %s34_s10 = sadd.s32 1, %s812_s30 }
   0xb   : > { %s31_s11 = ssub.s32 %s816_s8, %s890_s9  ;;  %p41_p0 = scmp.ne.s32.totalorder %s812_s30, %s808_s29 }
   0xc   : > { %p32_p1 = scmp.eq.s32.totalorder %s31_s11, 0  ;;  %p42_p2 = scmp.eq.s32.totalorder %s816_s8, 0 }
   0xd   : > { %p47_p3 = scmp.ne.s32.totalorder %s808_s29, %s804_s28  ;;  %p48_p4 = scmp.eq.s32.totalorder %s886_s2, 0 }
   0xe   : > { %s902_s12 = scalar_select %p32_p1, %s812_s30, %s34_s10  }
   0xf   : > { %p904_p5 = por %p42_p2, %p41_p0  ;;  %p908_p6 = por %p48_p4, %p47_p3 }
  0x10   : > { %p197_p7 = scmp.eq.s32.totalorder %s886_s2, 1  ;;  %p203_p8 = scmp.eq.s32.totalorder %s629_s4, 1 }
  0x11   : > { %p669_p10 = scmp.lt.s32.totalorder %s816_s8, 2  ;;  %s241_s17 = sand.u32 1, %s812_s30  }
  0x12   : > { %p915_p11 = por %p197_p7, %p41_p0  ;;  %p919_p12 = por %p203_p8, %p47_p3 }
  0x13   : > { %s655_s18 = sshll.u32 %s816_s8, 3  ;;  %s632_s19 = sshll.u32 %s241_s17, 3 }
  0x14   : > { %s250_s22 = scalar_lea.hbm %s1032_s0, %s655_s18  ;;  %s245_s24 = scalar_lea.vmem [#allocation4], %s632_s19 }
  0x15   : > { %s252_s23 = sshll.u32 %s250_s22, 4  ;;  %s254_s25 = sshll.u32 %s245_s24, 4  ;;  %s253_s23 = int_to_ptr.hbm [resolvable:$true] %s252_s23  ;;  %s255_s25 = int_to_ptr.vmem [resolvable:$true] %s254_s25 }
  0x16   : > { %p930_p13 = pnand %p669_p10, %p904_p5  ;;  %p635_p0 = scmp.ge.s32.totalorder %s816_s8, 1 }
  0x17   : > { %p259_p1 = scmp.lt.s32.totalorder %s816_s8, 3  ;;  %s242_s27 = scalar_lea.sflag [#allocation5], %s241_s17 }
  0x18   : > { %s720_s4 = sshra.s32 %s253_s23, 4  ;;  %p724_p3 = pneg %p930_p13  ;;  %s721_s4 = int_to_ptr.hbm [resolvable:$true] %s720_s4 }
  0x19   : > { %s722_s10 = scalar_lea.hbm %s721_s4, 8  ;;  %s727_s13 = scalar_lea.hbm %s1032_s0, 16 }
  0x1a   : > { %p723_p2 = scmp.ne.s32.totalorder %s721_s4, %s722_s10  ;;  %p728_p5 = scmp.lt.s32.totalorder %s721_s4, %s1032_s0 }
  0x1b   : > { %p729_p8 = scmp.lt.s32.totalorder %s727_s13, %s722_s10 }
  0x1c   : > { %p725_p4 = pnand %p724_p3, %p723_p2 }
  0x1d   : > { %p730_p10 = por %p729_p8, %p728_p5 }
  0x1e   : > { %p726_p7 = pneg %p725_p4 }
  0x20   : > { %p731_p9 = pnand %p730_p10, %p726_p7 }
  0x22   : > { %734 = shalt.err (!%p731_p9)
}
  0x23   : > { %664 = dma.hbm_to_vmem [thread:$0]  (!%p930_p13), %s253_s23, 128, %s255_s25, %s242_s27  }
  0x24   : > { %p260_p2 = pnand %p635_p0, %p259_p1 }
  0x25   : > { %s951_s17 = sand.u32 (!%p260_p2), 1, %s808_s29  }
  0x26   : > { %263 = sbr.rel (%p260_p2) target bundleno = 685 (0x2ad), region = 48  ;;  %s636_s21 = sshll.u32 (!%p260_p2), %s951_s17, 3 }
  0x27   : > { %s266_s22 = scalar_lea.sflag (!%p260_p2), [#allocation5], %s951_s17  ;;  %s269_s24 = scalar_lea.vmem (!%p260_p2), [#allocation4], %s636_s21 }
  0x2b   : > { %795 = dma.done.wait (%p908_p6), %s266_s22, 128  }
  0x2c   : > { %797 = vsyncadd (%p908_p6), %s266_s22, 4294967168  ;;  %v818_v2 = vmov 0   ;;  %v961_v3 = vld [vmem:[%s269_s24] sm:$0xff]  ;;  %v303_v4 = vld [vmem:[#allocation2] sm:$0x1]  ;;  %vm318_vm0 = vcmask 1043456  }
  0x2d   : > { %704 = vset.pattern.permute.xlu0 %v818_v2  ;;  %705 = vset.pattern.permute.xlu2 %v818_v2  ;;  %311 = vst [vmem:[#allocation1] ss:$2 sm:$0xff] %v961_v3  ;;  %v302_v5 = vld [vmem:[%s1033_s1] sm:$0x1]  ;;  %vm314_vm1 = vcmask 31744   ;;  %vm363_vm2 = vcmask 1040384  }
  0x2e   : > { %306 = vperm.xlu0 %704, %v303_v4   ;;  %v430_v38 = vld [vmem:[%s1035_s3] sm:$0x1]  ;;  %v431_v40 = vld [vmem:[#allocation3] sm:$0x1]  ;;  %s656_s18 = sshll.u32 %s886_s2, 3  ;;  %s300_s22 = scalar_lea.vmem [#allocation7], %s636_s21 }
  0x2f   : > { %434 = vperm.xlu2 %705, %v431_v40   ;;  %v402_v46 = vld [vmem:[%s1036_s5] sm:$0xf]  ;;  %s554_s20 = scalar_lea.hbm %s1038_s7, %s656_s18  ;;  %s556_s24 = sshll.u32 %s300_s22, 4  ;;  %s557_s24 = int_to_ptr.vmem [resolvable:$true] %s556_s24 }
  0x30   : > { %v403_v47 = vld [vmem:[%s1037_s6] sm:$0xf]  ;;  %s558_s23 = sshll.u32 %s554_s20, 4  ;;  %s543_s2 = scalar_lea.sflag [#allocation6], %s951_s17  ;;  %s559_s23 = int_to_ptr.hbm [resolvable:$true] %s558_s23 }
  0x31   : > { %s764_s25 = sshra.s32 %s559_s23, 4  ;;  %s770_s21 = scalar_lea.hbm %s1038_s7, 16  ;;  %s765_s25 = int_to_ptr.hbm [resolvable:$true] %s764_s25 }
  0x32   : > { %s766_s14 = scalar_lea.hbm %s765_s25, 8  ;;  %p771_p0 = scmp.lt.s32.totalorder %s765_s25, %s1038_s7 }
  0x33   : > { %p767_p6 = scmp.ne.s32.totalorder %s765_s25, %s766_s14  ;;  %p772_p1 = scmp.lt.s32.totalorder %s770_s21, %s766_s14 }
  0x34   : > { %v312_v6 = vld.sshfl [vmem:[#allocation1] sm:$0xff pattern:$0x75316420]  ;;  %v313_v7 = vld.sshfl [vmem:[#allocation1 + $0x8] sm:$0xff pattern:$0x75316420] }
  0x35   : > { %638 = vmatpush.msk.msra.mxu0 %vm318_vm0, %v312_v6  ;;  %640 = vmatpush.msk.msra.mxu1 %vm318_vm0, %v313_v7  ;;  %p768_p9 = pnand %p767_p6, %p915_p11  ;;  %p773_p3 = por %p772_p1, %p771_p0 }
  0x36   : > { %639 = vmatmul.msk.f32.vlgmr.msra.gmra.mxu0 %vm314_vm1, %v302_v5  ;;  %641 = vmatmul.msk.f32.vlgmr.msra.gmra.mxu1 %vm314_vm1, %v302_v5 }
  0x37   : > { %p769_p13 = pneg %p768_p9 }
  0x39   : > { %p774_p4 = pnand %p773_p3, %p769_p13 }
  0x89   : > { %v435_v50 = vpop.permute.xlu2 %434 }
  0x8a   : > { %v437_v51 = vperm.slane %v435_v50, 0 }
  0xa0   : > { %v307_v8 = vpop.permute.xlu0 %306 }
  0xa1   : > { %v309_v9 = vperm.slane %v307_v8, 0 }
  0xb3   : > { %v340_v10 = vpop.f32.mrf.mxu0  ;;  %v360_v11 = vpop.f32.mrf.mxu1 }
  0xb4   : > { %v341_v12 = vadd.f32 %v340_v10, %v309_v9  ;;  %v361_v13 = vadd.f32 %v360_v11, %v309_v9 }
  0xb6   : > { %v364_v14 = vsel %vm363_vm2, %v341_v12, -inf  ;;  %v365_v15 = vsel %vm363_vm2, %v361_v13, -inf }
  0xb7   : > { %v366_v16 = vmax.f32 %v364_v14, %v365_v15 }
  0xb9   : > { %367 = vmax.xlane.f32.xlu0 %v366_v16 }
 0x12c   : > { %v368_v17 = vpop.xlane.xlu0 %367 }
 0x12d   : > { %v369_v18 = vsub.f32 %v341_v12, %v368_v17  ;;  %v370_v19 = vsub.f32 %v361_v13, %v368_v17 }
 0x12f   : > { %v371_v20 = vmul.f32 1.442695, %v369_v18  ;;  %v373_v21 = vmul.f32 1.442695, %v370_v19 }
 0x131   : > { %706 = vpow2.f32 %v371_v20 }
 0x132   : > { %708 = vpow2.f32 %v373_v21 }
 0x137   : > { %v707_v22 = vpop.eup %706 }
 0x138   : > { %v709_v23 = vpop.eup %708  ;;  %v375_v24 = vsel %vm363_vm2, %v707_v22, 0.0  ;;  %v380_v28 = vperm.slane %v707_v22, 0 }
 0x139   : > { %v381_v25 = vperm.slane %v709_v23, 0  ;;  %v376_v26 = vsel %vm363_vm2, %v709_v23, 0.0 }
 0x13a   : > { %v377_v27 = vadd.f32 %v376_v26, %v375_v24 }
 0x13b   : > { %v384_v29 = vrot.slane %v381_v25, 4 }
 0x13c   : > { %378 = vadd.xlane.f32.xlu1 %v377_v27 }
 0x13d   : > { %v385_v30 = vsel %vm318_vm0, %v380_v28, %v384_v29 }
 0x13e   : > { %v387_v31 = vmul.f32 %v385_v30, %v961_v3 }
 0x140   : > { %389 = vst [vmem:[#allocation1] ss:$2 sm:$0xff] %v387_v31 }
 0x147   : > { %v390_v32 = vld.sshfl [vmem:[#allocation1] sm:$0xff pattern:$0x75316420]  ;;  %v391_v33 = vld.sshfl [vmem:[#allocation1 + $0x8] sm:$0xff pattern:$0x75316420] }
 0x148   : > { %v394_v34 = vsel %vm318_vm0, %v390_v32, 0.0  ;;  %v395_v35 = vsel %vm318_vm0, %v391_v33, 0.0  ;;  %438 = vst [vmem:[#allocation1] ss:$2 sm:$0xff] %v961_v3 }
 0x149   : > { %v396_v36 = vadd.f32 %v395_v35, %v394_v34 }
 0x14b   : > { %397 = vadd.xlane.f32.xlu1 %v396_v36 }
 0x14f   : > { %v439_v37 = vld.sshfl [vmem:[#allocation1] sm:$0xff pattern:$0x75316420]  ;;  %v440_v39 = vld.sshfl [vmem:[#allocation1 + $0x8] sm:$0xff pattern:$0x75316420] }
 0x150   : > { %644 = vmatpush.msk.msra.mxu3 %vm318_vm0, %v439_v37  ;;  %646 = vmatpush.msk.msrb.mxu0 %vm318_vm0, %v440_v39 }
 0x151   : > { %645 = vmatmul.msk.f32.vlgmr.msra.gmra.mxu3 %vm314_vm1, %v430_v38  ;;  %647 = vmatmul.msk.f32.vlgmr.msrb.gmra.mxu0 %vm314_vm1, %v430_v38 }
 0x1af   : > { %v379_v41 = vpop.xlane.xlu1 %378 }
 0x1b0   : > { %710 = vrcp.f32 %v379_v41 }
 0x1b6   : > { %v711_v42 = vpop.eup %710 }
 0x1b7   : > { %v400_v43 = vperm.slane %v711_v42, 0 }
 0x1be   : > { %v398_v44 = vpop.xlane.xlu1 %397 }
 0x1bf   : > { %v401_v45 = vmul.f32 %v400_v43, %v398_v44 }
 0x1c1   : > { %642 = vmatpush.msk.msra.mxu2 %vm318_vm0, %v401_v45 }
 0x1c2   : > { %643 = vmatmul.msk.f32.vlgmr.msra.gmra.mxu2 %vm314_vm1, %v402_v46 }
 0x1ce   : > { %v485_v52 = vpop.f32.mrf.mxu0 }
 0x1cf   : > { %v486_v54 = vadd.f32 %v485_v52, %v437_v51 }
 0x1d1   : > { %v649_v56 = vmul.f32 -1.442695, %v486_v54 }
 0x1d3   : > { %712 = vpow2.f32 %v649_v56 }
 0x1d4   : > { %v465_v53 = vpop.f32.mrf.mxu3 }
 0x1d5   : > { %v466_v55 = vadd.f32 %v465_v53, %v437_v51 }
 0x1d7   : > { %v648_v57 = vmul.f32 -1.442695, %v466_v55 }
 0x1d9   : > { %714 = vpow2.f32 %v648_v57  ;;  %v713_v58 = vpop.eup %712 }
 0x1da   : > { %v495_v60 = vadd.f32 1.0, %v713_v58 }
 0x1dc   : > { %716 = vrcp.f32 %v495_v60  ;;  %vm516_vm3 = vweird.f32 %v495_v60  ;;  %v522_v7 = vand.u32 2147483648, %v495_v60  ;;  %v520_v9 = vand.u32 2147483647, %v495_v60 }
 0x1de   : > { %v523_v13 = vor.u32 1.1754944e-38, %v522_v7  ;;  %vm521_vm9 = vcmp.eq.f32.partialorder %v520_v9, 8.507059e+37 }
 0x1df   : > { %v715_v59 = vpop.eup %714 }
 0x1e0   : > { %v494_v61 = vadd.f32 1.0, %v715_v59 }
 0x1e2   : > { %718 = vrcp.f32 %v494_v61  ;;  %v717_v62 = vpop.eup %716  ;;  %vm501_vm5 = vweird.f32 %v494_v61  ;;  %v507_v10 = vand.u32 2147483648, %v494_v61  ;;  %v505_v12 = vand.u32 2147483647, %v494_v61 }
 0x1e3   : > { %v512_v0 = vmul.f32 %v717_v62, %v495_v60  ;;  %vm517_vm4 = vweird.f32 %v717_v62 }
 0x1e4   : > { %vm518_vm7 = vmor %vm516_vm3, %vm517_vm4  ;;  %v508_v15 = vor.u32 1.1754944e-38, %v507_v10  ;;  %vm506_vm10 = vcmp.eq.f32.partialorder %v505_v12, 8.507059e+37 }
 0x1e5   : > { %v513_v2 = vsub.f32 1.0, %v512_v0 }
 0x1e7   : > { %v514_v5 = vmul.f32 %v717_v62, %v513_v2 }
 0x1e8   : > { %v719_v63 = vpop.eup %718 }
 0x1e9   : > { %v497_v1 = vmul.f32 %v719_v63, %v494_v61  ;;  %vm502_vm6 = vweird.f32 %v719_v63  ;;  %v515_v8 = vadd.f32 %v717_v62, %v514_v5 }
 0x1ea   : > { %vm503_vm8 = vmor %vm501_vm5, %vm502_vm6 }
 0x1eb   : > { %v498_v4 = vsub.f32 1.0, %v497_v1  ;;  %v519_v14 = vsel %vm518_vm7, %v717_v62, %v515_v8 }
 0x1ec   : > { %v524_v17 = vsel %vm521_vm9, %v523_v13, %v519_v14 }
 0x1ed   : > { %v499_v6 = vmul.f32 %v719_v63, %v498_v4  ;;  %v532_v19 = vperm.slane %v524_v17, 0 }
 0x1ef   : > { %v500_v11 = vadd.f32 %v719_v63, %v499_v6 }
 0x1f1   : > { %v504_v16 = vsel %vm503_vm8, %v719_v63, %v500_v11 }
 0x1f2   : > { %v509_v18 = vsel %vm506_vm10, %v508_v15, %v504_v16 }
 0x1f3   : > { %v531_v21 = vperm.slane %v509_v18, 0 }
 0x245   : > { %v427_v48 = vpop.f32.mrf.mxu2 }
 0x246   : > { %v428_v49 = vadd.f32 %v427_v48, %v403_v47 }
 0x248   : > { %528 = vperm.xlu2 %705, %v428_v49  }
 0x2a2   : > { %v529_v20 = vpop.permute.xlu2 %528 }
 0x2a3   : > { %v534_v22 = vmul.f32 %v532_v19, %v529_v20  ;;  %v533_v23 = vmul.f32 %v531_v21, %v529_v20 }
 0x2a5   : > { %v537_v24 = vrot.slane %v534_v22, 4 }
 0x2a7   : > { %v538_v25 = vsel %vm318_vm0, %v533_v23, %v537_v24 }
 0x2a8   : > { %v540_v26 = vadd.f32 %v538_v25, %v961_v3 }
 0x2aa   : > { %541 = vst [vmem:[%s300_s22] sm:$0xff] %v540_v26 }
 0x2ab   : > { %777 = shalt.err (!%p774_p4)
}
 0x2ac   : > { %659 = dma.vmem_to_hbm [thread:$0]  (%p915_p11), %s557_s24, 128, %s559_s23, %s543_s2  }
 0x2ad PF: > { %s570_s17 = sand.u32 1, %s804_s28   ;;  %p1045_p7 = scmp.ge.s32.totalorder %s816_s8, 2 }
 0x2ae   : > { %s571_s11 = scalar_lea.sflag [#allocation6], %s570_s17 }
 0x2af   : > { %p666_p5 = pnand %p1045_p7, %p919_p12 }
 0x2b1   : > { %p667_p8 = pneg %p666_p5 }
 0x2b3   : > { %799 = dma.done.wait (%p667_p8), %s571_s11, 128  }
 0x2b4   : > { %801 = vsyncadd (%p667_p8), %s571_s11, 4294967168  ;;  %p24_p10 = scmp.ge.s32.totalorder %s890_s9, 4   ;;  %s1046_s28 = smov %s808_s29 }
 0x2b5   : > { %s1047_s29 = smov %s812_s30  ;;  %s1048_s30 = smov %s902_s12 }
 0x2b6   : > { %s1049_s8 = smov %s890_s9  ;;  %26 = sbr.rel (!%p24_p10) target bundleno = 9 (0x9), region = 93 }
 0x2bb   :  { %577 = vsyncpa [#allocation5], 1 }
 0x2bc   :  { %579 = vsyncpa [#allocation5 + $0x1], 1 }
 0x2bd   :  { %580 = vsyncpa [#allocation6], 1 }
 0x2be   :  { %582 = vsyncpa [#allocation6 + $0x1], 1 }

</bundles_post_ra>
